<compile_context>
chip_gen: v7x
topology: tpu7x:2x2x1
jax: 0.10.0
libtpu: 0.0.40
codegen_flags: <defaults>
</compile_context>

<pallas_src>
import functools

import jax
import jax.numpy as jnp
from jax import lax
from jax.experimental import pallas as pl
from jax.experimental.pallas import tpu as pltpu


def _round_up(x, m):
    return ((x + m - 1) // m) * m


# --------------------------------------------------------------------------
# Kernel: grid = (batch, time-tile).  Manual double-buffered halo DMA for x,
# K shifted (tile_t, C_in) @ (C_in, C_out) MXU matmuls accumulated in f32.
# --------------------------------------------------------------------------
def conv1d_kernel(x_hbm, w_ref, b_ref, o_ref, xbuf, sem, *,
                  kernel_size, dilation, padding, tile_t, seq_len,
                  dma_rows, guard_l):
    # x_hbm : (B, T, C_in)          x.dtype, HBM (pl.ANY) -- manual DMA
    # w_ref : (K, C_in, C_out)      bf16, resident in VMEM
    # b_ref : (1, C_out)            f32
    # o_ref : (1, tile_t, C_out)    out dtype
    # xbuf  : (2, buf_rows, C_in)   x.dtype VMEM scratch (double buffer)
    # sem   : DMA semaphores (2,)
    bi = pl.program_id(0)
    ti = pl.program_id(1)
    n_t = pl.num_programs(1)
    slot = ti % 2
    buf_rows = xbuf.shape[1]
    c_in = xbuf.shape[2]

    def window_start(t_idx):
        # desired (virtual, zero-padded) window start and clamped HBM start
        w0 = t_idx * tile_t - padding
        s0 = jnp.clip(w0, 0, seq_len - dma_rows)
        return w0, s0

    def x_copy(t_idx, s):
        _, s0 = window_start(t_idx)
        return pltpu.make_async_copy(
            x_hbm.at[bi, pl.ds(s0, dma_rows), :],
            xbuf.at[s, pl.ds(guard_l, dma_rows), :],
            sem.at[s])

    # ---- pipeline prologue: first time tile of this batch element ----------
    @pl.when(ti == 0)
    def _():
        # Zero the guard rows once.  No DMA ever writes them, so they stay
        # zero and act as the conv's left zero-padding / right overshoot rows.
        if guard_l > 0:
            z = jnp.zeros((guard_l, c_in), xbuf.dtype)
            xbuf[0, :guard_l, :] = z
            xbuf[1, :guard_l, :] = z
        tail = buf_rows - (guard_l + dma_rows)
        if tail > 0:
            zt = jnp.zeros((tail, c_in), xbuf.dtype)
            xbuf[0, guard_l + dma_rows:, :] = zt
            xbuf[1, guard_l + dma_rows:, :] = zt
        x_copy(ti, slot).start()                      # prime slot 0

    # ---- prefetch the next tile's input window (double buffered) -----------
    @pl.when(ti + 1 < n_t)
    def _():
        x_copy(ti + 1, (ti + 1) % 2).start()

    # ---- wait for this tile's input window ----------------------------------
    x_copy(ti, slot).wait()

    # ---- compute: K shifted matmuls, f32 accumulation -----------------------
    w0, s0 = window_start(ti)
    base = guard_l + (w0 - s0)          # buffer row that holds "virtual" row w0
    c_out = o_ref.shape[-1]
    acc = jnp.zeros((tile_t, c_out), jnp.float32)
    for k in range(kernel_size):        # small static K -> unrolled at trace time
        # TODO(synk): derive the k taps from one aligned superblock with
        #   pltpu.roll (or im2col into a single deeper matmul on v6e/v7x) to
        #   avoid the per-tap unaligned-sublane reload.
        xs = xbuf[slot, pl.ds(base + k * dilation, tile_t), :]
        acc += jnp.dot(xs.astype(jnp.bfloat16), w_ref[k],
                       preferred_element_type=jnp.float32)
    o_ref[0] = (acc + b_ref[...]).astype(o_ref.dtype)


# --------------------------------------------------------------------------
# Wrapper: mirrors Conv.forward semantics  (B, T, C_in) -> (B, T_out, C_out)
# --------------------------------------------------------------------------
def conv_forward(x, weight, bias, *, kernel_size=1, stride=1, padding=0,
                 dilation=1, max_tile_t=256, out_dtype=None):
    """
    x      : (B, T, C_in)  (f32 or bf16; bf16 halves input HBM traffic)
    weight : (C_out, C_in, K) f32    (PyTorch nn.Conv1d layout)
    bias   : (C_out,) f32
    """
    assert stride == 1, "TODO(synk): stride > 1 not implemented"
    B, T, C_in = x.shape
    C_out, C_in_w, K = weight.shape
    assert C_in_w == C_in and K == kernel_size
    out_dtype = x.dtype if out_dtype is None else out_dtype

    halo = dilation * (K - 1)
    T_out = T + 2 * padding - halo
    assert T_out > 0

    # time tile: multiple of 16 (bf16 sublane packing); capped so the f32
    # accumulator (tile_t x C_out) stays within ~128 KiB of vregs.
    acc_budget = 128 * 1024
    cap = max(16, (acc_budget // (4 * C_out)) // 16 * 16)
    tile_t = min(max_tile_t, cap, _round_up(T_out, 16))
    tile_t = max(16, (tile_t // 16) * 16)
    n_t = pl.cdiv(T_out, tile_t)

    win = tile_t + halo                 # input rows needed per output tile
    dma_rows = min(win, T)              # static DMA length
    guard_l = padding                   # zero rows for the left conv padding

    # worst-case buffer row touched (last, possibly ragged, time tile)
    w0_last = (n_t - 1) * tile_t - padding
    s0_last = min(max(w0_last, 0), T - dma_rows)
    buf_rows = max(guard_l + max(w0_last - s0_last, 0) + halo + tile_t,
                   guard_l + dma_rows)
    buf_rows = _round_up(buf_rows, 8)

    # weights -> (K, C_in, C_out) bf16 for the MXU (tiny one-time op)
    w = jnp.transpose(weight, (2, 1, 0)).astype(jnp.bfloat16)
    b = bias.reshape(1, C_out).astype(jnp.float32)

    # explicit VMEM budget (conservative estimate + headroom), v7x-friendly cap
    x_item = jnp.dtype(x.dtype).itemsize
    o_item = jnp.dtype(out_dtype).itemsize
    vmem_need = (2 * buf_rows * C_in * x_item          # x halo scratch (2 slots)
                 + 2 * K * C_in * C_out * 2            # weights (double buffer)
                 + 2 * C_out * 4                       # bias
                 + 2 * tile_t * C_out * o_item)        # output blocks
    vmem_limit = int(min(max(2 * vmem_need + (8 << 20), 16 << 20), 64 << 20))

    kernel = functools.partial(
        conv1d_kernel, kernel_size=K, dilation=dilation, padding=padding,
        tile_t=tile_t, seq_len=T, dma_rows=dma_rows, guard_l=guard_l)

    return pl.pallas_call(
        kernel,
        out_shape=jax.ShapeDtypeStruct((B, T_out, C_out), out_dtype),
        grid_spec=pltpu.PrefetchScalarGridSpec(
            num_scalar_prefetch=0,
            grid=(B, n_t),
            in_specs=[
                pl.BlockSpec(memory_space=pl.ANY),                        # x in HBM
                pl.BlockSpec((K, C_in, C_out), lambda bi, ti: (0, 0, 0)),  # weights
                pl.BlockSpec((1, C_out), lambda bi, ti: (0, 0)),           # bias
            ],
            out_specs=pl.BlockSpec((1, tile_t, C_out), lambda bi, ti: (bi, ti, 0)),
            scratch_shapes=[
                pltpu.VMEM((2, buf_rows, C_in), x.dtype),
                pltpu.SemaphoreType.DMA((2,)),
            ]),
        compiler_params=pltpu.CompilerParams(
            # time axis is "arbitrary": manual DMA prefetch is primed at ti==0
            # and carries state across consecutive time tiles.
            dimension_semantics=("parallel", "arbitrary"),
            vmem_limit_bytes=vmem_limit),
    )(x, w, b)


# --------------------------------------------------------------------------
# Pure-JAX reference (== Conv.forward: transpose -> Conv1d -> transpose)
# --------------------------------------------------------------------------
def conv_reference(x, weight, bias, *, stride=1, padding=0, dilation=1):
    y = lax.conv_general_dilated(
        jnp.transpose(x, (0, 2, 1)),           # (B, C_in, T)
        weight,                                # (C_out, C_in, K)
        window_strides=(stride,),
        padding=[(padding, padding)],
        rhs_dilation=(dilation,),
        dimension_numbers=("NCH", "OIH", "NCH"))
    return jnp.transpose(y, (0, 2, 1)) + bias[None, None, :]


def _make_params(key, c_in, c_out, k):
    kw, kb = jax.random.split(key)
    fan_in, fan_out = c_in * k, c_out * k
    w_std = (2.0 / (fan_in + fan_out)) ** 0.5       # xavier ('linear') init
    weight = (w_std * jax.random.normal(kw, (c_out, c_in, k))).astype(jnp.float32)
    bias = (0.1 * jax.random.normal(kb, (c_out,))).astype(jnp.float32)
    return weight, bias


if __name__ == "__main__":
    key = jax.random.PRNGKey(0)
    k1, k2, k3, k4 = jax.random.split(key, 4)

    # ---- test 1: B=2, T=16, C=128->128, K=3, pad=1 (typical "same" conv) ----
    B, T, C_IN, C_OUT, K, PAD, DIL = 2, 16, 128, 128, 3, 1, 1
    x = jax.random.normal(k1, (B, T, C_IN), dtype=jnp.float32)
    weight, bias = _make_params(k2, C_IN, C_OUT, K)

    out = conv_forward(x, weight, bias, kernel_size=K, stride=1,
                       padding=PAD, dilation=DIL)
    out = jax.block_until_ready(out)
    ref = conv_reference(x, weight, bias, stride=1, padding=PAD, dilation=DIL)
    T_OUT = T + 2 * PAD - DIL * (K - 1)
    assert out.shape == (B, T_OUT, C_OUT)
    assert bool(jnp.all(jnp.isfinite(out)))
    assert bool(jnp.allclose(out, ref, atol=5e-2, rtol=5e-2)), (
        float(jnp.max(jnp.abs(out - ref))))

    # ---- test 2: dilation, multiple time tiles, ragged last tile ------------
    B2, T2, K2, PAD2, DIL2 = 1, 40, 3, 1, 2
    x2 = jax.random.normal(k3, (B2, T2, C_IN), dtype=jnp.float32)
    weight2, bias2 = _make_params(k4, C_IN, C_OUT, K2)

    out2 = conv_forward(x2, weight2, bias2, kernel_size=K2, stride=1,
                        padding=PAD2, dilation=DIL2, max_tile_t=16)
    out2 = jax.block_until_ready(out2)
    ref2 = conv_reference(x2, weight2, bias2, stride=1, padding=PAD2,
                          dilation=DIL2)
    T_OUT2 = T2 + 2 * PAD2 - DIL2 * (K2 - 1)
    assert out2.shape == (B2, T_OUT2, C_OUT)
    assert bool(jnp.all(jnp.isfinite(out2)))
    assert bool(jnp.allclose(out2, ref2, atol=5e-2, rtol=5e-2)), (
        float(jnp.max(jnp.abs(out2 - ref2))))

    print("KERNEL_OK")
</pallas_src>

<mosaic_0001>
module attributes {stable_mosaic.version = 11 : i64} {
  func.func @conv1d_kernel(%arg0: i32, %arg1: i32, %arg2: memref<2x16x128xf32, #tpu.memory_space<any>>, %arg3: memref<3x128x128xbf16, #tpu.memory_space<vmem>>, %arg4: memref<1x128xf32, #tpu.memory_space<vmem>>, %arg5: memref<1x16x128xf32, #tpu.memory_space<vmem>>, %arg6: memref<2x24x128xf32, #tpu.memory_space<vmem>>, %arg7: memref<2x!tpu.dma_semaphore, #tpu.memory_space<semaphore_mem>>) attributes {dimension_semantics = [#tpu.dimension_semantics<parallel>, #tpu.dimension_semantics<arbitrary>], iteration_bounds = array<i64: 2, 1>, scalar_prefetch = 0 : i64, scratch_operands = 2 : i64, tpu.core_type = #tpu.core_type<tc>, window_params = [{}, {pipeline_mode = #tpu.pipeline_mode<synchronous>, transform_indices = @transform_1, window_bounds = array<i64: 3, 128, 128>}, {pipeline_mode = #tpu.pipeline_mode<synchronous>, transform_indices = @transform_2, window_bounds = array<i64: 1, 128>}, {transform_indices = @transform_3, window_bounds = array<i64: 1, 16, 128>}]} {
    %c2_i32 = arith.constant 2 : i32
    %c0_i32 = arith.constant 0 : i32
    %0 = arith.cmpi eq, %c2_i32, %c0_i32 : i32
    %c1_i32 = arith.constant 1 : i32
    %1 = arith.select %0, %c1_i32, %c2_i32 : i32
    %2 = arith.remsi %arg1, %1 : i32
    %c0_i32_0 = arith.constant 0 : i32
    %3 = arith.cmpi ne, %2, %c0_i32_0 : i32
    %c0_i32_1 = arith.constant 0 : i32
    %4 = arith.cmpi slt, %2, %c0_i32_1 : i32
    %c0_i32_2 = arith.constant 0 : i32
    %5 = arith.cmpi slt, %1, %c0_i32_2 : i32
    %6 = arith.xori %4, %5 : i1
    %7 = arith.andi %6, %3 : i1
    %8 = arith.addi %2, %1 : i32
    %9 = arith.select %7, %8, %2 : i32
    %c0_i32_3 = arith.constant 0 : i32
    %10 = arith.cmpi eq, %arg1, %c0_i32_3 : i32
    %11 = arith.extui %10 : i1 to i32
    %c0_i32_4 = arith.constant 0 : i32
    %12 = arith.cmpi ne, %11, %c0_i32_4 : i32
    scf.if %12 {
      %cst_39 = arith.constant 0.000000e+00 : f32
      %70 = vector.broadcast %cst_39 : f32 to vector<1x128xf32>
      %c0_40 = arith.constant 0 : index
      %c0_41 = arith.constant 0 : index
      %c0_42 = arith.constant 0 : index
      %71 = vector.load %arg6[%c0_40, %c0_41, %c0_42] : memref<2x24x128xf32, #tpu.memory_space<vmem>>, vector<1x1x128xf32>
      %72 = vector.shape_cast %71 : vector<1x1x128xf32> to vector<1x128xf32>
      %73 = vector.shape_cast %70 : vector<1x128xf32> to vector<1x1x128xf32>
      tpu.vector_store %arg6[%c0_40, %c0_41, %c0_42], %73 {strides = array<i32>} : memref<2x24x128xf32, #tpu.memory_space<vmem>>, vector<1x1x128xf32>,
      %c1_43 = arith.constant 1 : index
      %c0_44 = arith.constant 0 : index
      %c0_45 = arith.constant 0 : index
      %74 = vector.load %arg6[%c1_43, %c0_44, %c0_45] : memref<2x24x128xf32, #tpu.memory_space<vmem>>, vector<1x1x128xf32>
      %75 = vector.shape_cast %74 : vector<1x1x128xf32> to vector<1x128xf32>
      %76 = vector.shape_cast %70 : vector<1x128xf32> to vector<1x1x128xf32>
      tpu.vector_store %arg6[%c1_43, %c0_44, %c0_45], %76 {strides = array<i32>} : memref<2x24x128xf32, #tpu.memory_space<vmem>>, vector<1x1x128xf32>,
      %cst_46 = arith.constant 0.000000e+00 : f32
      %77 = vector.broadcast %cst_46 : f32 to vector<7x128xf32>
      %c0_47 = arith.constant 0 : index
      %c17 = arith.constant 17 : index
      %c0_48 = arith.constant 0 : index
      %78 = vector.load %arg6[%c0_47, %c17, %c0_48] : memref<2x24x128xf32, #tpu.memory_space<vmem>>, vector<1x7x128xf32>
      %79 = vector.shape_cast %78 : vector<1x7x128xf32> to vector<7x128xf32>
      %80 = vector.shape_cast %77 : vector<7x128xf32> to vector<1x7x128xf32>
      tpu.vector_store %arg6[%c0_47, %c17, %c0_48], %80 {strides = array<i32>} : memref<2x24x128xf32, #tpu.memory_space<vmem>>, vector<1x7x128xf32>,
      %c1_49 = arith.constant 1 : index
      %c17_50 = arith.constant 17 : index
      %c0_51 = arith.constant 0 : index
      %81 = vector.load %arg6[%c1_49, %c17_50, %c0_51] : memref<2x24x128xf32, #tpu.memory_space<vmem>>, vector<1x7x128xf32>
      %82 = vector.shape_cast %81 : vector<1x7x128xf32> to vector<7x128xf32>
      %83 = vector.shape_cast %77 : vector<7x128xf32> to vector<1x7x128xf32>
      tpu.vector_store %arg6[%c1_49, %c17_50, %c0_51], %83 {strides = array<i32>} : memref<2x24x128xf32, #tpu.memory_space<vmem>>, vector<1x7x128xf32>,
      %c16_i32_52 = arith.constant 16 : i32
      %84 = arith.muli %arg1, %c16_i32_52 : i32
      %c1_i32_53 = arith.constant 1 : i32
      %85 = arith.subi %84, %c1_i32_53 : i32
      %c0_i32_54 = arith.constant 0 : i32
      %c0_i32_55 = arith.constant 0 : i32
      %86 = arith.maxsi %c0_i32_54, %85 : i32
      %87 = arith.minsi %c0_i32_55, %86 : i32
      %c0_i32_56 = arith.constant 0 : i32
      %88 = tpu.memref_slice %arg2[%arg0, %87, %c0_i32_56] : memref<2x16x128xf32, #tpu.memory_space<any>> -> memref<1x16x128xf32, #tpu.memory_space<any>>
      %89 = tpu.memref_squeeze %88 : memref<1x16x128xf32, #tpu.memory_space<any>> -> memref<16x128xf32, #tpu.memory_space<any>>
      %c1_i32_57 = arith.constant 1 : i32
      %c0_i32_58 = arith.constant 0 : i32
      %90 = tpu.memref_slice %arg6[%9, %c1_i32_57, %c0_i32_58] : memref<2x24x128xf32, #tpu.memory_space<vmem>> -> memref<1x16x128xf32, #tpu.memory_space<vmem>>
      %91 = tpu.memref_squeeze %90 : memref<1x16x128xf32, #tpu.memory_space<vmem>> -> memref<16x128xf32, #tpu.memory_space<vmem>>
      %92 = tpu.memref_slice %arg7[%9] : memref<2x!tpu.dma_semaphore, #tpu.memory_space<semaphore_mem>> -> memref<1x!tpu.dma_semaphore, #tpu.memory_space<semaphore_mem>>
      %93 = tpu.memref_squeeze %92 : memref<1x!tpu.dma_semaphore, #tpu.memory_space<semaphore_mem>> -> memref<!tpu.dma_semaphore, #tpu.memory_space<semaphore_mem>>
      tpu.enqueue_dma source(%89 : memref<16x128xf32, #tpu.memory_space<any>>) target(%91 : memref<16x128xf32, #tpu.memory_space<vmem>>) target_semaphore(%93 : memref<!tpu.dma_semaphore, #tpu.memory_space<semaphore_mem>>)
    } else {
    }
    %c1_i32_5 = arith.constant 1 : i32
    %13 = arith.addi %arg1, %c1_i32_5 : i32
    %c1_i32_6 = arith.constant 1 : i32
    %14 = arith.cmpi slt, %13, %c1_i32_6 : i32
    %15 = arith.extui %14 : i1 to i32
    %c0_i32_7 = arith.constant 0 : i32
    %16 = arith.cmpi ne, %15, %c0_i32_7 : i32
    scf.if %16 {
      %c1_i32_39 = arith.constant 1 : i32
      %70 = arith.addi %arg1, %c1_i32_39 : i32
      %c1_i32_40 = arith.constant 1 : i32
      %71 = arith.addi %arg1, %c1_i32_40 : i32
      %c2_i32_41 = arith.constant 2 : i32
      %c0_i32_42 = arith.constant 0 : i32
      %72 = arith.cmpi eq, %c2_i32_41, %c0_i32_42 : i32
      %c1_i32_43 = arith.constant 1 : i32
      %73 = arith.select %72, %c1_i32_43, %c2_i32_41 : i32
      %74 = arith.remsi %71, %73 : i32
      %c0_i32_44 = arith.constant 0 : i32
      %75 = arith.cmpi ne, %74, %c0_i32_44 : i32
      %c0_i32_45 = arith.constant 0 : i32
      %76 = arith.cmpi slt, %74, %c0_i32_45 : i32
      %c0_i32_46 = arith.constant 0 : i32
      %77 = arith.cmpi slt, %73, %c0_i32_46 : i32
      %78 = arith.xori %76, %77 : i1
      %79 = arith.andi %78, %75 : i1
      %80 = arith.addi %74, %73 : i32
      %81 = arith.select %79, %80, %74 : i32
      %c16_i32_47 = arith.constant 16 : i32
      %82 = arith.muli %70, %c16_i32_47 : i32
      %c1_i32_48 = arith.constant 1 : i32
      %83 = arith.subi %82, %c1_i32_48 : i32
      %c0_i32_49 = arith.constant 0 : i32
      %c0_i32_50 = arith.constant 0 : i32
      %84 = arith.maxsi %c0_i32_49, %83 : i32
      %85 = arith.minsi %c0_i32_50, %84 : i32
      %c0_i32_51 = arith.constant 0 : i32
      %86 = tpu.memref_slice %arg2[%arg0, %85, %c0_i32_51] : memref<2x16x128xf32, #tpu.memory_space<any>> -> memref<1x16x128xf32, #tpu.memory_space<any>>
      %87 = tpu.memref_squeeze %86 : memref<1x16x128xf32, #tpu.memory_space<any>> -> memref<16x128xf32, #tpu.memory_space<any>>
      %c1_i32_52 = arith.constant 1 : i32
      %c0_i32_53 = arith.constant 0 : i32
      %88 = tpu.memref_slice %arg6[%81, %c1_i32_52, %c0_i32_53] : memref<2x24x128xf32, #tpu.memory_space<vmem>> -> memref<1x16x128xf32, #tpu.memory_space<vmem>>
      %89 = tpu.memref_squeeze %88 : memref<1x16x128xf32, #tpu.memory_space<vmem>> -> memref<16x128xf32, #tpu.memory_space<vmem>>
      %90 = tpu.memref_slice %arg7[%81] : memref<2x!tpu.dma_semaphore, #tpu.memory_space<semaphore_mem>> -> memref<1x!tpu.dma_semaphore, #tpu.memory_space<semaphore_mem>>
      %91 = tpu.memref_squeeze %90 : memref<1x!tpu.dma_semaphore, #tpu.memory_space<semaphore_mem>> -> memref<!tpu.dma_semaphore, #tpu.memory_space<semaphore_mem>>
      tpu.enqueue_dma source(%87 : memref<16x128xf32, #tpu.memory_space<any>>) target(%89 : memref<16x128xf32, #tpu.memory_space<vmem>>) target_semaphore(%91 : memref<!tpu.dma_semaphore, #tpu.memory_space<semaphore_mem>>)
    } else {
    }
    %c16_i32 = arith.constant 16 : i32
    %17 = arith.muli %arg1, %c16_i32 : i32
    %c1_i32_8 = arith.constant 1 : i32
    %18 = arith.subi %17, %c1_i32_8 : i32
    %c0_i32_9 = arith.constant 0 : i32
    %c0_i32_10 = arith.constant 0 : i32
    %19 = arith.maxsi %c0_i32_9, %18 : i32
    %20 = arith.minsi %c0_i32_10, %19 : i32
    %c0_i32_11 = arith.constant 0 : i32
    %21 = tpu.memref_slice %arg2[%arg0, %20, %c0_i32_11] : memref<2x16x128xf32, #tpu.memory_space<any>> -> memref<1x16x128xf32, #tpu.memory_space<any>>
    %22 = tpu.memref_squeeze %21 : memref<1x16x128xf32, #tpu.memory_space<any>> -> memref<16x128xf32, #tpu.memory_space<any>>
    %c1_i32_12 = arith.constant 1 : i32
    %c0_i32_13 = arith.constant 0 : i32
    %23 = tpu.memref_slice %arg6[%9, %c1_i32_12, %c0_i32_13] : memref<2x24x128xf32, #tpu.memory_space<vmem>> -> memref<1x16x128xf32, #tpu.memory_space<vmem>>
    %24 = tpu.memref_squeeze %23 : memref<1x16x128xf32, #tpu.memory_space<vmem>> -> memref<16x128xf32, #tpu.memory_space<vmem>>
    %25 = tpu.memref_slice %arg7[%9] : memref<2x!tpu.dma_semaphore, #tpu.memory_space<semaphore_mem>> -> memref<1x!tpu.dma_semaphore, #tpu.memory_space<semaphore_mem>>
    %26 = tpu.memref_squeeze %25 : memref<1x!tpu.dma_semaphore, #tpu.memory_space<semaphore_mem>> -> memref<!tpu.dma_semaphore, #tpu.memory_space<semaphore_mem>>
    tpu.wait_dma2 semaphore(%26 : memref<!tpu.dma_semaphore, #tpu.memory_space<semaphore_mem>>) src(%22 : memref<16x128xf32, #tpu.memory_space<any>>) dst(%24 : memref<16x128xf32, #tpu.memory_space<vmem>>)
    %c16_i32_14 = arith.constant 16 : i32
    %27 = arith.muli %arg1, %c16_i32_14 : i32
    %c1_i32_15 = arith.constant 1 : i32
    %28 = arith.subi %27, %c1_i32_15 : i32
    %c0_i32_16 = arith.constant 0 : i32
    %c0_i32_17 = arith.constant 0 : i32
    %29 = arith.maxsi %c0_i32_16, %28 : i32
    %30 = arith.minsi %c0_i32_17, %29 : i32
    %31 = arith.subi %28, %30 : i32
    %c1_i32_18 = arith.constant 1 : i32
    %32 = arith.addi %c1_i32_18, %31 : i32
    %cst = arith.constant 0.000000e+00 : f32
    %33 = vector.broadcast %cst : f32 to vector<16x128xf32>
    %c0_i32_19 = arith.constant 0 : i32
    %34 = arith.addi %32, %c0_i32_19 : i32
    %35 = arith.index_cast %9 : i32 to index
    %36 = arith.index_cast %34 : i32 to index
    %c0 = arith.constant 0 : index
    %37 = vector.load %arg6[%35, %36, %c0] : memref<2x24x128xf32, #tpu.memory_space<vmem>>, vector<1x16x128xf32>
    %38 = vector.shape_cast %37 : vector<1x16x128xf32> to vector<16x128xf32>
    %39 = arith.truncf %38 : vector<16x128xf32> to vector<16x128xbf16>
    %c0_20 = arith.constant 0 : index
    %c0_21 = arith.constant 0 : index
    %c0_22 = arith.constant 0 : index
    %40 = vector.load %arg3[%c0_20, %c0_21, %c0_22] : memref<3x128x128xbf16, #tpu.memory_space<vmem>>, vector<1x128x128xbf16>
    %41 = vector.shape_cast %40 : vector<1x128x128xbf16> to vector<128x128xbf16>
    %cst_23 = arith.constant dense<0.000000e+00> : vector<16x128xf32>
    %42 = tpu.matmul %39, %41, %cst_23 {dimension_numbers = #tpu.dot_dimension_numbers<[1], [0], [0], [1], [0, 0, 1, 1], [], []>} : vector<16x128xbf16>, vector<128x128xbf16>, vector<16x128xf32> -> vector<16x128xf32>
    %43 = arith.addf %33, %42 : vector<16x128xf32>
    %c1_i32_24 = arith.constant 1 : i32
    %44 = arith.addi %32, %c1_i32_24 : i32
    %45 = arith.index_cast %9 : i32 to index
    %46 = arith.index_cast %44 : i32 to index
    %c0_25 = arith.constant 0 : index
    %47 = vector.load %arg6[%45, %46, %c0_25] : memref<2x24x128xf32, #tpu.memory_space<vmem>>, vector<1x16x128xf32>
    %48 = vector.shape_cast %47 : vector<1x16x128xf32> to vector<16x128xf32>
    %49 = arith.truncf %48 : vector<16x128xf32> to vector<16x128xbf16>
    %c1 = arith.constant 1 : index
    %c0_26 = arith.constant 0 : index
    %c0_27 = arith.constant 0 : index
    %50 = vector.load %arg3[%c1, %c0_26, %c0_27] : memref<3x128x128xbf16, #tpu.memory_space<vmem>>, vector<1x128x128xbf16>
    %51 = vector.shape_cast %50 : vector<1x128x128xbf16> to vector<128x128xbf16>
    %cst_28 = arith.constant dense<0.000000e+00> : vector<16x128xf32>
    %52 = tpu.matmul %49, %51, %cst_28 {dimension_numbers = #tpu.dot_dimension_numbers<[1], [0], [0], [1], [0, 0, 1, 1], [], []>} : vector<16x128xbf16>, vector<128x128xbf16>, vector<16x128xf32> -> vector<16x128xf32>
    %53 = arith.addf %43, %52 : vector<16x128xf32>
    %c2_i32_29 = arith.constant 2 : i32
    %54 = arith.addi %32, %c2_i32_29 : i32
    %55 = arith.index_cast %9 : i32 to index
    %56 = arith.index_cast %54 : i32 to index
    %c0_30 = arith.constant 0 : index
    %57 = vector.load %arg6[%55, %56, %c0_30] : memref<2x24x128xf32, #tpu.memory_space<vmem>>, vector<1x16x128xf32>
    %58 = vector.shape_cast %57 : vector<1x16x128xf32> to vector<16x128xf32>
    %59 = arith.truncf %58 : vector<16x128xf32> to vector<16x128xbf16>
    %c2 = arith.constant 2 : index
    %c0_31 = arith.constant 0 : index
    %c0_32 = arith.constant 0 : index
    %60 = vector.load %arg3[%c2, %c0_31, %c0_32] : memref<3x128x128xbf16, #tpu.memory_space<vmem>>, vector<1x128x128xbf16>
    %61 = vector.shape_cast %60 : vector<1x128x128xbf16> to vector<128x128xbf16>
    %cst_33 = arith.constant dense<0.000000e+00> : vector<16x128xf32>
    %62 = tpu.matmul %59, %61, %cst_33 {dimension_numbers = #tpu.dot_dimension_numbers<[1], [0], [0], [1], [0, 0, 1, 1], [], []>} : vector<16x128xbf16>, vector<128x128xbf16>, vector<16x128xf32> -> vector<16x128xf32>
    %63 = arith.addf %53, %62 : vector<16x128xf32>
    %c0_34 = arith.constant 0 : index
    %c0_35 = arith.constant 0 : index
    %64 = vector.load %arg4[%c0_34, %c0_35] : memref<1x128xf32, #tpu.memory_space<vmem>>, vector<1x128xf32>
    %65 = vector.broadcast %64 : vector<1x128xf32> to vector<16x128xf32>
    %66 = arith.addf %63, %65 : vector<16x128xf32>
    %c0_36 = arith.constant 0 : index
    %c0_37 = arith.constant 0 : index
    %c0_38 = arith.constant 0 : index
    %67 = vector.load %arg5[%c0_36, %c0_37, %c0_38] : memref<1x16x128xf32, #tpu.memory_space<vmem>>, vector<1x16x128xf32>
    %68 = vector.shape_cast %67 : vector<1x16x128xf32> to vector<16x128xf32>
    %69 = vector.shape_cast %66 : vector<16x128xf32> to vector<1x16x128xf32>
    tpu.vector_store %arg5[%c0_36, %c0_37, %c0_38], %69 {strides = array<i32>} : memref<1x16x128xf32, #tpu.memory_space<vmem>>, vector<1x16x128xf32>,
    return
  }
  func.func @transform_1(%arg0: i32, %arg1: i32) -> (i32, i32, i32) {
    %c0_i32 = arith.constant 0 : i32
    %c0_i32_0 = arith.constant 0 : i32
    %c0_i32_1 = arith.constant 0 : i32
    %c0_i32_2 = arith.constant 0 : i32
    return %c0_i32, %c0_i32_0, %c0_i32_1 : i32, i32, i32
  }
  func.func @transform_2(%arg0: i32, %arg1: i32) -> (i32, i32) {
    %c0_i32 = arith.constant 0 : i32
    %c0_i32_0 = arith.constant 0 : i32
    %c0_i32_1 = arith.constant 0 : i32
    return %c0_i32, %c0_i32_0 : i32, i32
  }
  func.func @transform_3(%arg0: i32, %arg1: i32) -> (i32, i32, i32) {
    %c0_i32 = arith.constant 0 : i32
    %c0_i32_0 = arith.constant 0 : i32
    return %arg0, %arg1, %c0_i32 : i32, i32, i32
  }
}

</mosaic_0001>

<bundles_post_ra>
// kernel: tpu_custom_call.1
= control target key start
LH: loop header
LB: loop body
LE: loop exit
PB: predicated region body
PF: predicated region fallthrough
CT: control target
= control target key end

     0   :  { %8 = vsyncpa [#allocation5], 0  ;;  %s1348_s0 = inlined_call_operand.hbm [shape: f32[2,16,128], index: 0, kind: input, shape index: {}]   ;;  %s1349_s1 = inlined_call_operand.hbm [shape: bf16[3,128,128], index: 1, kind: input, shape index: {}]   ;;  %s1350_s2 = inlined_call_operand.vmem [shape: f32[1,128], index: 2, kind: input, shape index: {}]   ;;  %s1351_s3 = inlined_call_operand.hbm [shape: f32[2,16,128], index: 3, kind: output, shape index: {}]  }
   0x1   :  { %9 = vsyncpa [#allocation6], 0 }
   0x2   :  { %11 = vsyncpa [#allocation6 + $0x1], 0  ;;  %s1140_s12 = smov 0   ;;  %s1142_s13 = smov 0  }
   0x3   :  { %s1144_s14 = smov 0   ;;  %s1146_s15 = smov 0  }
   0x4   :  { %s1148_s16 = smov 0   ;;  %s1150_s17 = smov 0  }
   0x5 LB: > { %s733_s18 = sadd.s32 4294967295, %s1109_s17   ;;  %s734_s19 = sadd.s32 4294967294, %s1109_s17   ;;  %s1109_s17 = sphi %s1150_s17, %s17_s17   ;;  %s1105_s16 = sphi %s1148_s16, %s1369_s16   ;;  %s1101_s15 = sphi %s1146_s15, %s1368_s15   ;;  %s1097_s14 = sphi %s1144_s14, %s1367_s14   ;;  %s1093_s13 = sphi %s1142_s13, %s1366_s13   ;;  %s1089_s12 = sphi %s1140_s12, %s1365_s12  }
   0x6   : > { %s29_s20 = sadd.s32 1, %s1105_s16  ;;  %s80_s21 = sadd.s32 1, %s1097_s14 }
   0x7   : > { %p31_p0 = scmp.ge.s32.totalorder %s29_s20, 2  ;;  %p90_p1 = scmp.ne.s32.totalorder %s1097_s14, %s1093_s13 }
   0x8   : > { %p91_p2 = scmp.eq.s32.totalorder %s733_s18, 1  ;;  %p96_p3 = scmp.ne.s32.totalorder %s1093_s13, %s1089_s12 }
   0x9   : > { %s1371_s20 = smov (%p31_p0, %s29_s20), 0  ;;  %p97_p5 = scmp.eq.s32.totalorder %s734_s19, 1 }
   0xa   : > { %p1180_p4 = por %p91_p2, %p90_p1  ;;  %s75_s23 = ssub.s32 %s1105_s16, %s1371_s20 }
   0xb   : > { %p735_p6 = scmp.ge.s32.totalorder %s1109_s17, 1  ;;  %p78_p7 = scmp.eq.s32.totalorder %s75_s23, 0 }
   0xc   : > { %s1356_s22 = scalar_select %p1180_p4, 1, 0 }
   0xd   : > { %p1187_p8 = por %p97_p5, %p96_p3  ;;  %p104_p9 = scmp.lt.s32.totalorder %s1109_s17, 3 }
   0xe   : > { %s1193_s25 = scalar_select %p78_p7, %s1097_s14, %s80_s21  }
   0xf   : > { %s1357_s24 = scalar_select %p1187_p8, 1, 0 }
  0x10   : > { %p1195_p10 = pnand %p735_p6, %p104_p9  ;;  %p1199_p11 = scmp.eq.s32.totalorder %s733_s18, 0 }
  0x11   : > { %s1111_s28 = smov [#allocation4]   ;;  %s973_s6 = scalar_lea.hbm %s1349_s1, 3072 }
  0x12   : > { %s1358_s26 = scalar_select %p1195_p10, 1, 0 }
  0x13   : > { %s1359_s27 = scalar_select %p1199_p11, 1, 0 }
  0x14   : > { %p882_p12 = pneg %p1195_p10  ;;  %s116_s29 = sshll.u32 %s1111_s28, 4  ;;  %s117_s29 = int_to_ptr.vmem [resolvable:$true] %s116_s29 }
  0x15   : > { %p974_p0 = scmp.ne.s32.totalorder %s1349_s1, %s973_s6  ;;  %p980_p5 = scmp.lt.u32.totalorder %s973_s6, %s1349_s1 }
  0x16   : > { %p1207_p13 = pnand %p1199_p11, %p882_p12 }
  0x18   : > { %p975_p1 = pneg %p1207_p13 }
  0x1a   : > { %p976_p2 = pnand %p975_p1, %p974_p0 }
  0x1c   : > { %p977_p3 = pneg %p976_p2 }
  0x1e   : > { %p982_p6 = pnand %p980_p5, %p977_p3 }
  0x20   : > { %985 = shalt.err (!%p982_p6)
}
  0x21   : > { %s986_s11 = scalar_lea.vmem %s117_s29, 3072  ;;  %p994_p8 = scmp.lt.s32.totalorder %s117_s29, %s117_s29 }
  0x22   : > { %p987_p7 = scmp.ne.s32.totalorder %s117_s29, %s986_s11  ;;  %p995_p4 = scmp.lt.s32.totalorder %s986_s11, %s986_s11 }
  0x24   : > { %p989_p9 = pnand %p987_p7, %p975_p1  ;;  %p996_p11 = por %p995_p4, %p994_p8 }
  0x26   : > { %p990_p12 = pneg %p989_p9 }
  0x28   : > { %p997_p10 = pnand %p996_p11, %p990_p12 }
  0x2a   : > { %1000 = shalt.err (!%p997_p10)
}
  0x2b   : > { %s1112_s18 = smov 64   ;;  %s1113_s19 = smov 4  }
  0x2c   : > { %885 = dma.hbm_to_vmem [thread:$0]  (!%p1207_p13), %s1349_s1, 3072, %s117_s29, [#allocation5], %s1112_s18, %s1112_s18, %s1113_s19  }
  0x2d   : > { %p1361_p0 = scmp.ne.s32.totalorder %s1358_s26, 0 }
  0x2e   : > { %p1362_p2 = scmp.ne.s32.totalorder (!%p1361_p0), %s1359_s27, 0 }
  0x2f   : > { %135 = sbr.rel (%p1361_p0) target bundleno = 379 (0x17b), region = 28 }
  0x36   : > { %1078 = dma.done.wait (%p1362_p2), [#allocation5], 3072  }
  0x37   : > { %1080 = vsyncadd (%p1362_p2), [#allocation5], 4294964224  ;;  %s149_s28 = sand.u32 1, %s1093_s13   ;;  %s786_s4 = sshll.u32 %s1101_s15, 8  ;;  %v1114_v0 = vmov 0.0  }
  0x38   : > { %s1237_s30 = sshll.u32 %s149_s28, 4  ;;  %170 = vst [vmem:[#allocation2] sm:$0x1] %v1114_v0  ;;  %173 = vst [vmem:[#allocation2 + $0x11] sm:$0x7f] %v1114_v0  ;;  %s184_s27 = scalar_lea.hbm %s1348_s0, %s786_s4 }
  0x39   : > { %s1115_s5 = smov [#allocation2]   ;;  %s1001_s8 = scalar_lea.hbm %s184_s27, 256 }
  0x3a   : > { %s667_s6 = scalar_lea.vmem %s1115_s5, 1  ;;  %p1002_p4 = scmp.ne.s32.totalorder %s184_s27, %s1001_s8 }
  0x3b   : > { %s196_s7 = sshll.u32 %s667_s6, 4  ;;  %s1003_s11 = scalar_lea.hbm %s1348_s0, 512  ;;  %s197_s7 = int_to_ptr.vmem [resolvable:$true] %s196_s7 }
  0x3c   : > { %p1004_p8 = scmp.lt.u32.totalorder %s184_s27, %s1348_s0  ;;  %p1005_p10 = scmp.lt.u32.totalorder %s1003_s11, %s1001_s8 }
  0x3d   : > { %p1007_p13 = scmp.lt.u32.totalorder %s1001_s8, %s184_s27 }
  0x3e   : > { %p1006_p11 = por %p1005_p10, %p1004_p8 }
  0x40   : > { %p1008_p1 = por %p1007_p13, %p1006_p11 }
  0x42   : > { %p1009_p3 = pnand %p1008_p1, %p1002_p4 }
  0x44   : > { %1012 = shalt.err (!%p1009_p3)  }
  0x45   : > { %s1013_s21 = scalar_lea.vmem %s197_s7, 256  ;;  %s1015_s23 = sshll.u32 %s1115_s5, 4  ;;  %s1016_s23 = int_to_ptr.vmem [resolvable:$false] %s1015_s23 }
  0x46   : > { %p1014_p5 = scmp.ne.s32.totalorder %s197_s7, %s1013_s21  ;;  %s1017_s26 = scalar_lea.vmem %s1016_s23, 768 }
  0x47   : > { %p1018_p6 = scmp.lt.s32.totalorder %s197_s7, %s1016_s23  ;;  %p1019_p7 = scmp.lt.s32.totalorder %s1017_s26, %s1013_s21 }
  0x49   : > { %p1020_p9 = por %p1019_p7, %p1018_p6 }
  0x4b   : > { %p1021_p12 = pnand %p1020_p9, %p1014_p5 }
  0x4d   : > { %1024 = shalt.err (!%p1021_p12)  }
  0x4e   : > { %199 = dma.hbm_to_vmem [thread:$0]  %s184_s27, 256, %s197_s7, [#allocation3] }
  0x4f   : > { %s1253_s29 = scalar_lea.vmem [#allocation7], %s1237_s30 }
  0x50   : > { %1081 = dma.done.wait [#allocation3], 256 }
  0x51   : > { %1082 = vsyncadd [#allocation3], 4294967040  ;;  %816 = vmatprep.subr.bf16.mxu0 %v1114_v0  ;;  %836 = vmatprep.subr.bf16.mxu1 %v1114_v0  ;;  %vm1116_vm0 = vmmov 0   ;;  %v949_v1 = vld [vmem:[#allocation4 + $0x40] sm:$0xff]   ;;  %v951_v3 = vld [vmem:[#allocation4 + $0x48] sm:$0xff]   ;;  %s618_s5 = sshll.u32 %s1253_s29, 4  ;;  %s1294_s8 = scalar_lea.hbm %s1351_s3, %s786_s4  ;;  %s1297_s5 = int_to_ptr.vmem [resolvable:$true] %s618_s5 }
  0x52   : > { %832 = vmatprep.mubr.msk.bf16.mxu0 %vm1116_vm0, %v1114_v0  ;;  %852 = vmatprep.mubr.msk.bf16.mxu1 %vm1116_vm0, %v1114_v0  ;;  %v950_v2 = vld [vmem:[#allocation4] sm:$0xff]   ;;  %v952_v4 = vld [vmem:[#allocation4 + $0x8] sm:$0xff]   ;;  %v953_v5 = vld [vmem:[#allocation4 + $0x50] sm:$0xff]   ;;  %s1302_s9 = scalar_lea.sflag [#allocation6], %s149_s28  ;;  %s1025_s10 = scalar_lea.vmem %s1297_s5, 256 }
  0x53   : > { %817 = vmatpush3.bf16.msra.mxu0 %v949_v1  ;;  %837 = vmatpush3.bf16.msra.mxu1 %v950_v2  ;;  %v954_v6 = vld [vmem:[#allocation4 + $0x10] sm:$0xff]   ;;  %v955_v7 = vld [vmem:[#allocation4 + $0x58] sm:$0xff]   ;;  %v957_v9 = vld [vmem:[#allocation4 + $0x60] sm:$0xff]   ;;  %p1026_p0 = scmp.ne.s32.totalorder %s1297_s5, %s1025_s10  ;;  %p1363_p2 = scmp.ne.s32.totalorder %s1356_s22, 0 }
  0x54   : > { %818 = vmatprep.subr.bf16.mxu0 %v1114_v0  ;;  %838 = vmatprep.subr.bf16.mxu1 %v1114_v0  ;;  %v956_v8 = vld [vmem:[#allocation4 + $0x18] sm:$0xff]   ;;  %v958_v10 = vld [vmem:[#allocation4 + $0x20] sm:$0xff]   ;;  %v959_v11 = vld [vmem:[#allocation4 + $0x68] sm:$0xff]   ;;  %s1117_s15 = smov [#allocation7]  }
  0x55   : > { %v960_v12 = vld [vmem:[#allocation4 + $0x28] sm:$0xff]   ;;  %v961_v13 = vld [vmem:[#allocation4 + $0x70] sm:$0xff]   ;;  %v963_v15 = vld [vmem:[#allocation4 + $0x78] sm:$0xff]   ;;  %p1027_p4 = pnand %p1026_p0, %p1363_p2  ;;  %s1029_s11 = sshll.u32 %s1117_s15, 4  ;;  %s1030_s11 = int_to_ptr.vmem [resolvable:$false] %s1029_s11 }
  0x56   : > { %v962_v14 = vld [vmem:[#allocation4 + $0x30] sm:$0xff]   ;;  %v750_v17 = vld [vmem:[#allocation2 + $0x9] sm:$0xff]  ;;  %v966_v24 = vld [vmem:[#allocation4 + $0x88] sm:$0xff]   ;;  %s1031_s4 = scalar_lea.vmem %s1030_s11, 512  ;;  %p1032_p10 = scmp.lt.s32.totalorder %s1297_s5, %s1030_s11 }
  0x57   : > { %819 = vmatpush3.bf16.msra.mxu0 %v951_v3  ;;  %839 = vmatpush3.bf16.msra.mxu1 %v952_v4  ;;  %v749_v16 = vld [vmem:[#allocation2 + $0x1] sm:$0xff]  ;;  %v965_v23 = vld [vmem:[#allocation4 + $0x80] sm:$0xff]   ;;  %v970_v28 = vld [vmem:[#allocation4 + $0xa8] sm:$0xff]   ;;  %p1028_p8 = pneg %p1027_p4  ;;  %p1033_p11 = scmp.lt.s32.totalorder %s1031_s4, %s1025_s10 }
  0x58   : > { %820 = vmatprep.subr.bf16.mxu0 %v1114_v0  ;;  %840 = vmatprep.subr.bf16.mxu1 %v1114_v0  ;;  %v964_v18 = vld [vmem:[#allocation4 + $0x38] sm:$0xff]   ;;  %v746_v19 = vld [vmem:[#allocation2] sm:$0xff]  ;;  %v281_v21 = vpack.c.bf16 %v750_v17, %v749_v16  ;;  %v969_v27 = vld [vmem:[#allocation4 + $0xa0] sm:$0xff]  }
  0x59   : > { %v747_v20 = vld [vmem:[#allocation2 + $0x8] sm:$0xff]  ;;  %v967_v25 = vld [vmem:[#allocation4 + $0x90] sm:$0xff]   ;;  %p1034_p13 = por %p1033_p11, %p1032_p10 }
  0x5a   : > { %v259_v22 = vpack.c.bf16 %v747_v20, %v746_v19  ;;  %v968_v26 = vld [vmem:[#allocation4 + $0x98] sm:$0xff]   ;;  %v971_v29 = vld [vmem:[#allocation4 + $0xb0] sm:$0xff]  }
  0x5b   : > { %821 = vmatpush3.bf16.msra.mxu0 %v953_v5  ;;  %841 = vmatpush3.bf16.msra.mxu1 %v954_v6  ;;  %v972_v30 = vld [vmem:[#allocation4 + $0xb8] sm:$0xff]   ;;  %v778_v45 = vld [vmem:[%s1350_s2] ss:$0 sm:$0xff]  ;;  %p1035_p1 = pnand %p1034_p13, %p1028_p8 }
  0x5c   : > { %822 = vmatprep.subr.bf16.mxu0 %v1114_v0  ;;  %842 = vmatprep.subr.bf16.mxu1 %v1114_v0  ;;  %v768_v31 = vld [vmem:[#allocation2 + $0x2] sm:$0xff]  ;;  %v769_v32 = vld [vmem:[#allocation2 + $0xa] sm:$0xff] }
  0x5d   : > { %v482_v33 = vpack.c.bf16 %v769_v32, %v768_v31 }
  0x5f   : > { %823 = vmatpush3.bf16.msra.mxu0 %v955_v7  ;;  %843 = vmatpush3.bf16.msra.mxu1 %v956_v8 }
  0x60   : > { %824 = vmatprep.subr.bf16.mxu0 %v1114_v0  ;;  %844 = vmatprep.subr.bf16.mxu1 %v1114_v0 }
  0x63   : > { %825 = vmatpush3.bf16.msra.mxu0 %v957_v9  ;;  %845 = vmatpush3.bf16.msra.mxu1 %v958_v10 }
  0x64   : > { %826 = vmatprep.subr.bf16.mxu0 %v1114_v0  ;;  %846 = vmatprep.subr.bf16.mxu1 %v1114_v0 }
  0x67   : > { %827 = vmatpush3.bf16.msra.mxu0 %v959_v11  ;;  %847 = vmatpush3.bf16.msra.mxu1 %v960_v12 }
  0x68   : > { %828 = vmatprep.subr.bf16.mxu0 %v1114_v0  ;;  %848 = vmatprep.subr.bf16.mxu1 %v1114_v0 }
  0x6b   : > { %829 = vmatpush3.bf16.msra.mxu0 %v961_v13  ;;  %849 = vmatpush3.bf16.msra.mxu1 %v962_v14 }
  0x6c   : > { %830 = vmatprep.subr.bf16.mxu0 %v1114_v0  ;;  %850 = vmatprep.subr.bf16.mxu1 %v1114_v0 }
  0x6f   : > { %831 = vmatpush3.bf16.msra.mxu0 %v963_v15  ;;  %851 = vmatpush3.bf16.msra.mxu1 %v964_v18 }
  0x70   : > { %856 = vmatprep.subr.bf16.mxu0 %v1114_v0 }
  0x72   : > { %833 = vmatmul.mubr.bf16.vlgmr.msra.gmra.mrb[0].mxu0 %v281_v21  ;;  %853 = vmatmul.mubr.bf16.vlgmr.msra.gmra.mrb[0].mxu1 %v259_v22 }
  0x73   : > { %857 = vmatpush3.bf16.msra.mxu0 %v965_v23  ;;  %872 = vmatprep.mubr.msk.bf16.mxu0 %vm1116_vm0, %v1114_v0 }
  0x74   : > { %858 = vmatprep.subr.bf16.mxu0 %v1114_v0 }
  0x77   : > { %859 = vmatpush3.bf16.msra.mxu0 %v966_v24 }
  0x78   : > { %860 = vmatprep.subr.bf16.mxu0 %v1114_v0 }
  0x7b   : > { %861 = vmatpush3.bf16.msra.mxu0 %v967_v25 }
  0x7c   : > { %862 = vmatprep.subr.bf16.mxu0 %v1114_v0 }
  0x7f   : > { %863 = vmatpush3.bf16.msra.mxu0 %v968_v26 }
  0x80   : > { %864 = vmatprep.subr.bf16.mxu0 %v1114_v0 }
  0x83   : > { %865 = vmatpush3.bf16.msra.mxu0 %v969_v27 }
  0x84   : > { %866 = vmatprep.subr.bf16.mxu0 %v1114_v0 }
  0x87   : > { %867 = vmatpush3.bf16.msra.mxu0 %v970_v28 }
  0x88   : > { %868 = vmatprep.subr.bf16.mxu0 %v1114_v0 }
  0x8b   : > { %869 = vmatpush3.bf16.msra.mxu0 %v971_v29 }
  0x8c   : > { %870 = vmatprep.subr.bf16.mxu0 %v1114_v0 }
  0x8f   : > { %871 = vmatpush3.bf16.msra.mxu0 %v972_v30 }
  0x92   : > { %873 = vmatmul.mubr.bf16.vlgmr.msra.gmra.mrb[4].mxu0 %v482_v33 }
 0x145   : > { %v381_v34 = vpop.f32.mrb[0].mxu0  ;;  %v470_v35 = vpop.f32.mrb[0].mxu1 }
 0x146   : > { %v834_v36 = vpop.f32.mrb[1].mxu0  ;;  %v471_v37 = vadd.f32 %v470_v35, %v381_v34  ;;  %v854_v38 = vpop.f32.mrb[1].mxu1 }
 0x147   : > { %v384_v39 = vpop.f32.mrb[2].mxu0  ;;  %v473_v40 = vpop.f32.mrb[2].mxu1 }
 0x148   : > { %v835_v41 = vpop.f32.mrb[3].mxu0  ;;  %v474_v42 = vadd.f32 %v473_v40, %v384_v39  ;;  %v855_v43 = vpop.f32.mrb[3].mxu1 }
 0x165   : > { %v582_v44 = vpop.f32.mrb[4].mxu0 }
 0x166   : > { %v589_v46 = vadd.f32 %v582_v44, %v471_v37  ;;  %v874_v47 = vpop.f32.mrb[5].mxu0 }
 0x167   : > { %v585_v48 = vpop.f32.mrb[6].mxu0 }
 0x168   : > { %v598_v49 = vadd.f32 %v778_v45, %v589_v46  ;;  %v590_v50 = vadd.f32 %v585_v48, %v474_v42  ;;  %v875_v51 = vpop.f32.mrb[7].mxu0 }
 0x16a   : > { %600 = vst [vmem:[%s1253_s29] sm:$0xff] %v598_v49  ;;  %v599_v52 = vadd.f32 %v778_v45, %v590_v50 }
 0x16c   : > { %601 = vst [vmem:[%s1253_s29 + $0x8] sm:$0xff] %v599_v52 }
 0x16d   : > { %1038 = shalt.err (!%p1035_p1)
}
 0x16e   : > { %s1039_s28 = scalar_lea.hbm %s1294_s8, 256  ;;  %s1043_s21 = scalar_lea.hbm %s1351_s3, 512 }
 0x16f   : > { %p1040_p3 = scmp.ne.s32.totalorder %s1294_s8, %s1039_s28  ;;  %p1044_p7 = scmp.lt.u32.totalorder %s1294_s8, %s1351_s3 }
 0x170   : > { %p1045_p9 = scmp.lt.u32.totalorder %s1043_s21, %s1039_s28  ;;  %p1047_p0 = scmp.lt.u32.totalorder %s1039_s28, %s1294_s8 }
 0x171   : > { %p1041_p5 = pnand %p1040_p3, %p1363_p2 }
 0x172   : > { %p1046_p12 = por %p1045_p9, %p1044_p7 }
 0x173   : > { %p1042_p6 = pneg %p1041_p5 }
 0x174   : > { %p1048_p4 = por %p1047_p0, %p1046_p12 }
 0x176   : > { %p1049_p8 = pnand %p1048_p4, %p1042_p6 }
 0x178   : > { %1052 = shalt.err (!%p1049_p8)
}
 0x179   : > { %s1118_s29 = smov 128   ;;  %s1119_s30 = smov 8  }
 0x17a   : > { %880 = dma.vmem_to_hbm [thread:$0]  (%p1363_p2), %s1297_s5, 256, %s1294_s8, %s1302_s9, %s1118_s29, %s1118_s29, %s1119_s30  }
 0x17b PF: > { %p892_p10 = scmp.ge.s32.totalorder %s1109_s17, 2  ;;  %s633_s27 = sand.u32 1, %s1089_s12  }
 0x17c   : > { %p1364_p11 = scmp.ne.s32.totalorder %s1357_s24, 0  ;;  %s634_s6 = scalar_lea.sflag [#allocation6], %s633_s27 }
 0x17e   : > { %p887_p13 = pnand %p892_p10, %p1364_p11 }
 0x180   : > { %1084 = dma.done.wait (!%p887_p13), %s634_s6, 256  }
 0x181   : > { %1086 = vsyncadd (!%p887_p13), %s634_s6, 4294967040  ;;  %s17_s17 = sadd.s32 1, %s1109_s17   ;;  %s1365_s12 = smov %s1093_s13 }
 0x182   : > { %p14_p1 = scmp.ge.s32.totalorder %s17_s17, 4   ;;  %s1366_s13 = smov %s1097_s14 }
 0x183   : > { %s1367_s14 = smov %s1193_s25  ;;  %s1368_s15 = smov %s1105_s16 }
 0x184   : > { %s1369_s16 = smov %s1371_s20  ;;  %16 = sbr.rel (!%p14_p1) target bundleno = 5 (0x5), region = 95 }
 0x18b   :  { %639 = vsyncpa [#allocation5], 1 }
 0x18c   :  { %641 = vsyncpa [#allocation5 + $0x1], 1 }
 0x18d   :  { %642 = vsyncpa [#allocation6], 1 }
 0x18e   :  { %644 = vsyncpa [#allocation6 + $0x1], 1 }
 0x18f   :  { %645 = vsyncmov [#allocation3] }
 0x192   :  { %s646_s22 = vpop.sfrf %645 }
 0x193   :  { %p784_p2 = scmp.ne.s32.totalorder %s646_s22, 0 }
 0x195   :  { %650 = shalt.err (%p784_p2)  }
 0x196   :  { %652 = vsyncmov [#allocation3 + $0x1] }
 0x199   :  { %s653_s24 = vpop.sfrf %652 }
 0x19a   :  { %p785_p3 = scmp.ne.s32.totalorder %s653_s24, 0 }
 0x19c   :  { %657 = shalt.err (%p785_p3)  }

</bundles_post_ra>
